<compile_context>
chip_gen: v7x
topology: tpu7x:2x2x1
jax: 0.10.0
libtpu: 0.0.40
codegen_flags: <defaults>
</compile_context>

<pallas_src>
import functools

import jax
import jax.numpy as jnp
from jax import lax
from jax.experimental import pallas as pl
from jax.experimental.pallas import tpu as pltpu


# ----------------------------- Pallas kernel ------------------------------- #

def _mha_fused_kernel(x_ref, wqkv_ref, wproj_t_ref, bproj_ref, o_ref, cat_ref,
                      *, num_heads, bblk):
    """Fused multi-head causal attention + output projection for Bblk batch rows.

    x_ref      : (Bblk, T, C)  bf16 input block
    wqkv_ref   : (C, 3E)       bf16 packed, pre-transposed QKV weights
                               (Q columns pre-scaled by C**-0.5)
    wproj_t_ref: (E, E)        bf16 pre-transposed projection weight
    bproj_ref  : (1, E)        f32 projection bias
    o_ref      : (Bblk, T, E)  f32 lane-dense output block
    cat_ref    : (Bblk*T, E)   bf16 VMEM scratch for concatenated head outputs
    """
    Bblk, T, C = x_ref.shape
    E = wproj_t_ref.shape[0]
    Hs = E // num_heads

    # Single fused QKV projection: one (Bblk*T, C)@(C, 3E) bf16 MXU matmul, f32 acc.
    x2d = x_ref[...].reshape(Bblk * T, C)                       # bf16
    qkv = jnp.dot(x2d, wqkv_ref[...],
                  preferred_element_type=jnp.float32)           # (Bblk*T, 3E) f32
    qkv16 = qkv.astype(jnp.bfloat16)                            # MXU operands for attn

    # Causal mask built once per grid step, shared across all (b, h).
    row = lax.broadcasted_iota(jnp.int32, (T, T), 0)
    col = lax.broadcasted_iota(jnp.int32, (T, T), 1)
    causal = col <= row

    for b in range(bblk):                                       # static unroll (small)
        r0 = b * T
        for h in range(num_heads):
            lo = h * Hs
            qh = qkv16[r0:r0 + T, lo:lo + Hs]                   # (T, Hs) bf16 (pre-scaled)
            kh = qkv16[r0:r0 + T, E + lo:E + lo + Hs]
            vh = qkv16[r0:r0 + T, 2 * E + lo:2 * E + lo + Hs]

            # q @ k^T without an in-kernel transpose: contract the last dims.
            s = lax.dot_general(qh, kh, (((1,), (1,)), ((), ())),
                                preferred_element_type=jnp.float32)  # (T, T) f32
            s = jnp.where(causal, s, -jnp.inf)

            # Numerically stable softmax in f32; denominator reciprocal on the EUP.
            s = s - jnp.max(s, axis=-1, keepdims=True)
            p = jnp.exp(s)
            p = p * pl.reciprocal(jnp.sum(p, axis=-1, keepdims=True), approx=True)

            # P @ V on the MXU (bf16 operands, f32 acc); write head output directly
            # into the concat scratch at lane offset h*Hs (no concatenate copy).
            out_bh = jnp.dot(p.astype(jnp.bfloat16), vh,
                             preferred_element_type=jnp.float32)      # (T, Hs) f32
            cat_ref[r0:r0 + T, lo:lo + Hs] = out_bh.astype(jnp.bfloat16)

    # Fused output projection: one (Bblk*T, E)@(E, E) bf16 MXU matmul + f32 bias.
    y = jnp.dot(cat_ref[...], wproj_t_ref[...],
                preferred_element_type=jnp.float32) + bproj_ref[...]
    o_ref[...] = y.reshape(Bblk, T, E).astype(o_ref.dtype)


# ------------------------------ Python wrapper ------------------------------ #

def pack_mha_params(wk, wq, wv, w_proj, b_proj):
    """One-time (init-time) packing: pre-transpose, fold the C**-0.5 scale into the
    Q columns, and cast matmul weights to bf16.  Not part of the per-call path."""
    H, Hs, C = wq.shape
    E = H * Hs
    assert E == C == w_proj.shape[0]
    assert E % 128 == 0, "lane-dense layout expects E to be a multiple of 128"

    def _stack(w):                                    # (H, Hs, C) -> (C, H*Hs)
        return jnp.transpose(w, (2, 0, 1)).reshape(C, E)

    scale = C ** (-0.5)                               # matches PyTorch: C == n_embd
    wqkv = jnp.concatenate([_stack(wq) * scale, _stack(wk), _stack(wv)],
                           axis=1).astype(jnp.bfloat16)          # (C, 3E)
    wproj_t = w_proj.T.astype(jnp.bfloat16)                      # (E, E)
    bproj = b_proj.reshape(1, E).astype(jnp.float32)             # (1, E)
    return wqkv, wproj_t, bproj


def _pick_bblk(B, T):
    """Largest divisor of B that keeps Bblk*T near 256 MXU rows and the static
    per-(b, h) unroll small."""
    limit = max(1, min(B, 8, 256 // max(T, 1)))
    best = 1
    for cand in range(1, limit + 1):
        if B % cand == 0:
            best = cand
    return best


@functools.partial(jax.jit, static_argnames=("num_heads",))
def multi_head_attention(x, wqkv, wproj_t, bproj, *, num_heads):
    """x: (B, T, C) f32; wqkv: (C, 3E) bf16; wproj_t: (E, E) bf16; bproj: (1, E) f32.
    Returns (B, T, E) f32."""
    B, T, C = x.shape
    E = wproj_t.shape[0]
    Bblk = _pick_bblk(B, T)

    x16 = x.astype(jnp.bfloat16)                      # bf16 MXU operand
    kernel = functools.partial(_mha_fused_kernel, num_heads=num_heads, bblk=Bblk)

    return pl.pallas_call(
        kernel,
        out_shape=jax.ShapeDtypeStruct((B, T, E), jnp.float32),
        grid_spec=pltpu.PrefetchScalarGridSpec(
            num_scalar_prefetch=0,
            grid=(B // Bblk,),
            in_specs=[
                pl.BlockSpec((Bblk, T, C), lambda b: (b, 0, 0)),
                # constant index_maps -> weights/bias stay resident in VMEM
                pl.BlockSpec((C, 3 * E), lambda b: (0, 0)),
                pl.BlockSpec((E, E), lambda b: (0, 0)),
                pl.BlockSpec((1, E), lambda b: (0, 0)),
            ],
            out_specs=pl.BlockSpec((Bblk, T, E), lambda b: (b, 0, 0)),
            scratch_shapes=[pltpu.VMEM((Bblk * T, E), jnp.bfloat16)],
        ),
        compiler_params=pltpu.CompilerParams(
            dimension_semantics=("parallel",),
            vmem_limit_bytes=32 * 1024 * 1024,        # explicit; safe on v5e/v6e/v7x
        ),
    )(x16, wqkv, wproj_t, bproj)


# --------------------------- pure-JAX reference ----------------------------- #

def _reference(x, wk, wq, wv, w_proj, b_proj):
    B, T, C = x.shape
    H, Hs, _ = wk.shape
    outs = []
    mask = jnp.tril(jnp.ones((T, T), dtype=bool))
    for h in range(H):
        k = x @ wk[h].T
        q = x @ wq[h].T
        v = x @ wv[h].T
        wei = (q @ jnp.swapaxes(k, -2, -1)) * (C ** -0.5)
        wei = jnp.where(mask[None], wei, -jnp.inf)
        wei = jax.nn.softmax(wei, axis=-1)
        outs.append(wei @ v)
    cat = jnp.concatenate(outs, axis=-1)
    return cat @ w_proj.T + b_proj


# ----------------------------------- main ----------------------------------- #

if __name__ == "__main__":
    # Small shapes consistent with the module: n_embd = 256 = num_heads * head_size,
    # T <= block_size (100). head_size=128 keeps per-head slices lane-aligned.
    B, T = 2, 8
    num_heads, head_size = 2, 128
    n_embd = num_heads * head_size  # 256

    key = jax.random.PRNGKey(0)
    k_x, k_wk, k_wq, k_wv, k_wp, k_bp = jax.random.split(key, 6)

    x = jax.random.normal(k_x, (B, T, n_embd), dtype=jnp.float32)
    wk = 0.02 * jax.random.normal(k_wk, (num_heads, head_size, n_embd), jnp.float32)
    wq = 0.02 * jax.random.normal(k_wq, (num_heads, head_size, n_embd), jnp.float32)
    wv = 0.02 * jax.random.normal(k_wv, (num_heads, head_size, n_embd), jnp.float32)
    w_proj = 0.02 * jax.random.normal(k_wp, (n_embd, n_embd), jnp.float32)
    b_proj = 0.02 * jax.random.normal(k_bp, (n_embd,), jnp.float32)

    # Weight packing happens ONCE (init-time), outside the per-call jitted path.
    wqkv, wproj_t, bproj = pack_mha_params(wk, wq, wv, w_proj, b_proj)

    out = multi_head_attention(x, wqkv, wproj_t, bproj, num_heads=num_heads)
    out = jax.block_until_ready(out)

    ref = _reference(x, wk, wq, wv, w_proj, b_proj)
    assert out.shape == (B, T, n_embd)
    # tolerance accounts for bf16 MXU operands (f32 accumulation) and the approx
    # (EUP) reciprocal in the softmax denominator vs. the all-f32 reference.
    assert jnp.allclose(out, ref, atol=2e-2, rtol=2e-2), (
        "mismatch vs reference; max abs err = "
        f"{float(jnp.max(jnp.abs(out - ref)))}")

    print("KERNEL_OK")
</pallas_src>

<mosaic_0001>
module attributes {stable_mosaic.version = 11 : i64} {
  func.func @_mha_fused_kernel(%arg0: i32, %arg1: memref<2x8x256xbf16, #tpu.memory_space<vmem>>, %arg2: memref<256x768xbf16, #tpu.memory_space<vmem>>, %arg3: memref<256x256xbf16, #tpu.memory_space<vmem>>, %arg4: memref<1x256xf32, #tpu.memory_space<vmem>>, %arg5: memref<2x8x256xf32, #tpu.memory_space<vmem>>, %arg6: memref<16x256xbf16, #tpu.memory_space<vmem>>) attributes {dimension_semantics = [#tpu.dimension_semantics<parallel>], iteration_bounds = array<i64: 1>, scalar_prefetch = 0 : i64, scratch_operands = 1 : i64, tpu.core_type = #tpu.core_type<tc>, window_params = [{transform_indices = @transform_0, window_bounds = array<i64: 2, 8, 256>}, {pipeline_mode = #tpu.pipeline_mode<synchronous>, transform_indices = @transform_1, window_bounds = array<i64: 256, 768>}, {pipeline_mode = #tpu.pipeline_mode<synchronous>, transform_indices = @transform_2, window_bounds = array<i64: 256, 256>}, {pipeline_mode = #tpu.pipeline_mode<synchronous>, transform_indices = @transform_3, window_bounds = array<i64: 1, 256>}, {transform_indices = @transform_4, window_bounds = array<i64: 2, 8, 256>}]} {
    %c0 = arith.constant 0 : index
    %c0_0 = arith.constant 0 : index
    %c0_1 = arith.constant 0 : index
    %0 = vector.load %arg1[%c0, %c0_0, %c0_1] : memref<2x8x256xbf16, #tpu.memory_space<vmem>>, vector<2x8x256xbf16>
    %1 = vector.shape_cast %0 : vector<2x8x256xbf16> to vector<16x256xbf16>
    %c0_2 = arith.constant 0 : index
    %c0_3 = arith.constant 0 : index
    %2 = vector.load %arg2[%c0_2, %c0_3] : memref<256x768xbf16, #tpu.memory_space<vmem>>, vector<256x768xbf16>
    %cst = arith.constant dense<0.000000e+00> : vector<16x768xf32>
    %3 = tpu.matmul %1, %2, %cst {dimension_numbers = #tpu.dot_dimension_numbers<[1], [0], [0], [1], [0, 0, 1, 1], [], []>} : vector<16x256xbf16>, vector<256x768xbf16>, vector<16x768xf32> -> vector<16x768xf32>
    %4 = arith.truncf %3 : vector<16x768xf32> to vector<16x768xbf16>
    %5 = tpu.iota {dimensions = array<i32: 0>} : vector<8x8xi32>
    %6 = tpu.iota {dimensions = array<i32: 1>} : vector<8x8xi32>
    %7 = arith.cmpi sle, %6, %5 : vector<8x8xi32>
    %8 = vector.extract_strided_slice %4 {offsets = [0, 0], sizes = [8, 128], strides = [1, 1]} : vector<16x768xbf16> to vector<8x128xbf16>
    %9 = vector.extract_strided_slice %4 {offsets = [0, 256], sizes = [8, 128], strides = [1, 1]} : vector<16x768xbf16> to vector<8x128xbf16>
    %10 = vector.extract_strided_slice %4 {offsets = [0, 512], sizes = [8, 128], strides = [1, 1]} : vector<16x768xbf16> to vector<8x128xbf16>
    %cst_4 = arith.constant dense<0.000000e+00> : vector<8x8xf32>
    %11 = tpu.matmul %8, %9, %cst_4 {dimension_numbers = #tpu.dot_dimension_numbers<[1], [1], [0], [0], [0, 0, 1, 0], [], []>} : vector<8x128xbf16>, vector<8x128xbf16>, vector<8x8xf32> -> vector<8x8xf32>
    %cst_5 = arith.constant 0xFF800000 : f32
    %12 = vector.broadcast %cst_5 : f32 to vector<8x8xf32>
    %13 = arith.select %7, %11, %12 : vector<8x8xi1>, vector<8x8xf32>
    %cst_6 = arith.constant dense<0xFF800000> : vector<8xf32>
    %14 = vector.multi_reduction <maximumf>, %13, %cst_6 [1] : vector<8x8xf32> to vector<8xf32>
    %15 = vector.shape_cast %14 : vector<8xf32> to vector<8x1xf32>
    %16 = vector.broadcast %15 : vector<8x1xf32> to vector<8x8xf32>
    %17 = arith.subf %13, %16 : vector<8x8xf32>
    %18 = math.exp %17 : vector<8x8xf32>
    %cst_7 = arith.constant dense<0.000000e+00> : vector<8xf32>
    %19 = vector.multi_reduction <add>, %18, %cst_7 [1] : vector<8x8xf32> to vector<8xf32>
    %20 = vector.shape_cast %19 : vector<8xf32> to vector<8x1xf32>
    %21 = tpu.reciprocal %20 {approx = true} : vector<8x1xf32> -> vector<8x1xf32>
    %22 = vector.broadcast %21 : vector<8x1xf32> to vector<8x8xf32>
    %23 = arith.mulf %18, %22 : vector<8x8xf32>
    %24 = arith.truncf %23 : vector<8x8xf32> to vector<8x8xbf16>
    %cst_8 = arith.constant dense<0.000000e+00> : vector<8x128xf32>
    %25 = tpu.matmul %24, %10, %cst_8 {dimension_numbers = #tpu.dot_dimension_numbers<[1], [0], [0], [1], [0, 0, 1, 1], [], []>} : vector<8x8xbf16>, vector<8x128xbf16>, vector<8x128xf32> -> vector<8x128xf32>
    %26 = arith.truncf %25 : vector<8x128xf32> to vector<8x128xbf16>
    %c0_9 = arith.constant 0 : index
    %c0_10 = arith.constant 0 : index
    %27 = vector.load %arg6[%c0_9, %c0_10] : memref<16x256xbf16, #tpu.memory_space<vmem>>, vector<8x128xbf16>
    tpu.vector_store %arg6[%c0_9, %c0_10], %26 {strides = array<i32>} : memref<16x256xbf16, #tpu.memory_space<vmem>>, vector<8x128xbf16>,
    %28 = vector.extract_strided_slice %4 {offsets = [0, 128], sizes = [8, 128], strides = [1, 1]} : vector<16x768xbf16> to vector<8x128xbf16>
    %29 = vector.extract_strided_slice %4 {offsets = [0, 384], sizes = [8, 128], strides = [1, 1]} : vector<16x768xbf16> to vector<8x128xbf16>
    %30 = vector.extract_strided_slice %4 {offsets = [0, 640], sizes = [8, 128], strides = [1, 1]} : vector<16x768xbf16> to vector<8x128xbf16>
    %cst_11 = arith.constant dense<0.000000e+00> : vector<8x8xf32>
    %31 = tpu.matmul %28, %29, %cst_11 {dimension_numbers = #tpu.dot_dimension_numbers<[1], [1], [0], [0], [0, 0, 1, 0], [], []>} : vector<8x128xbf16>, vector<8x128xbf16>, vector<8x8xf32> -> vector<8x8xf32>
    %cst_12 = arith.constant 0xFF800000 : f32
    %32 = vector.broadcast %cst_12 : f32 to vector<8x8xf32>
    %33 = arith.select %7, %31, %32 : vector<8x8xi1>, vector<8x8xf32>
    %cst_13 = arith.constant dense<0xFF800000> : vector<8xf32>
    %34 = vector.multi_reduction <maximumf>, %33, %cst_13 [1] : vector<8x8xf32> to vector<8xf32>
    %35 = vector.shape_cast %34 : vector<8xf32> to vector<8x1xf32>
    %36 = vector.broadcast %35 : vector<8x1xf32> to vector<8x8xf32>
    %37 = arith.subf %33, %36 : vector<8x8xf32>
    %38 = math.exp %37 : vector<8x8xf32>
    %cst_14 = arith.constant dense<0.000000e+00> : vector<8xf32>
    %39 = vector.multi_reduction <add>, %38, %cst_14 [1] : vector<8x8xf32> to vector<8xf32>
    %40 = vector.shape_cast %39 : vector<8xf32> to vector<8x1xf32>
    %41 = tpu.reciprocal %40 {approx = true} : vector<8x1xf32> -> vector<8x1xf32>
    %42 = vector.broadcast %41 : vector<8x1xf32> to vector<8x8xf32>
    %43 = arith.mulf %38, %42 : vector<8x8xf32>
    %44 = arith.truncf %43 : vector<8x8xf32> to vector<8x8xbf16>
    %cst_15 = arith.constant dense<0.000000e+00> : vector<8x128xf32>
    %45 = tpu.matmul %44, %30, %cst_15 {dimension_numbers = #tpu.dot_dimension_numbers<[1], [0], [0], [1], [0, 0, 1, 1], [], []>} : vector<8x8xbf16>, vector<8x128xbf16>, vector<8x128xf32> -> vector<8x128xf32>
    %46 = arith.truncf %45 : vector<8x128xf32> to vector<8x128xbf16>
    %c0_16 = arith.constant 0 : index
    %c128 = arith.constant 128 : index
    %47 = vector.load %arg6[%c0_16, %c128] : memref<16x256xbf16, #tpu.memory_space<vmem>>, vector<8x128xbf16>
    tpu.vector_store %arg6[%c0_16, %c128], %46 {strides = array<i32>} : memref<16x256xbf16, #tpu.memory_space<vmem>>, vector<8x128xbf16>,
    %48 = vector.extract_strided_slice %4 {offsets = [8, 0], sizes = [8, 128], strides = [1, 1]} : vector<16x768xbf16> to vector<8x128xbf16>
    %49 = vector.extract_strided_slice %4 {offsets = [8, 256], sizes = [8, 128], strides = [1, 1]} : vector<16x768xbf16> to vector<8x128xbf16>
    %50 = vector.extract_strided_slice %4 {offsets = [8, 512], sizes = [8, 128], strides = [1, 1]} : vector<16x768xbf16> to vector<8x128xbf16>
    %cst_17 = arith.constant dense<0.000000e+00> : vector<8x8xf32>
    %51 = tpu.matmul %48, %49, %cst_17 {dimension_numbers = #tpu.dot_dimension_numbers<[1], [1], [0], [0], [0, 0, 1, 0], [], []>} : vector<8x128xbf16>, vector<8x128xbf16>, vector<8x8xf32> -> vector<8x8xf32>
    %cst_18 = arith.constant 0xFF800000 : f32
    %52 = vector.broadcast %cst_18 : f32 to vector<8x8xf32>
    %53 = arith.select %7, %51, %52 : vector<8x8xi1>, vector<8x8xf32>
    %cst_19 = arith.constant dense<0xFF800000> : vector<8xf32>
    %54 = vector.multi_reduction <maximumf>, %53, %cst_19 [1] : vector<8x8xf32> to vector<8xf32>
    %55 = vector.shape_cast %54 : vector<8xf32> to vector<8x1xf32>
    %56 = vector.broadcast %55 : vector<8x1xf32> to vector<8x8xf32>
    %57 = arith.subf %53, %56 : vector<8x8xf32>
    %58 = math.exp %57 : vector<8x8xf32>
    %cst_20 = arith.constant dense<0.000000e+00> : vector<8xf32>
    %59 = vector.multi_reduction <add>, %58, %cst_20 [1] : vector<8x8xf32> to vector<8xf32>
    %60 = vector.shape_cast %59 : vector<8xf32> to vector<8x1xf32>
    %61 = tpu.reciprocal %60 {approx = true} : vector<8x1xf32> -> vector<8x1xf32>
    %62 = vector.broadcast %61 : vector<8x1xf32> to vector<8x8xf32>
    %63 = arith.mulf %58, %62 : vector<8x8xf32>
    %64 = arith.truncf %63 : vector<8x8xf32> to vector<8x8xbf16>
    %cst_21 = arith.constant dense<0.000000e+00> : vector<8x128xf32>
    %65 = tpu.matmul %64, %50, %cst_21 {dimension_numbers = #tpu.dot_dimension_numbers<[1], [0], [0], [1], [0, 0, 1, 1], [], []>} : vector<8x8xbf16>, vector<8x128xbf16>, vector<8x128xf32> -> vector<8x128xf32>
    %66 = arith.truncf %65 : vector<8x128xf32> to vector<8x128xbf16>
    %c8 = arith.constant 8 : index
    %c0_22 = arith.constant 0 : index
    %67 = vector.load %arg6[%c8, %c0_22] : memref<16x256xbf16, #tpu.memory_space<vmem>>, vector<8x128xbf16>
    tpu.vector_store %arg6[%c8, %c0_22], %66 {strides = array<i32>} : memref<16x256xbf16, #tpu.memory_space<vmem>>, vector<8x128xbf16>,
    %68 = vector.extract_strided_slice %4 {offsets = [8, 128], sizes = [8, 128], strides = [1, 1]} : vector<16x768xbf16> to vector<8x128xbf16>
    %69 = vector.extract_strided_slice %4 {offsets = [8, 384], sizes = [8, 128], strides = [1, 1]} : vector<16x768xbf16> to vector<8x128xbf16>
    %70 = vector.extract_strided_slice %4 {offsets = [8, 640], sizes = [8, 128], strides = [1, 1]} : vector<16x768xbf16> to vector<8x128xbf16>
    %cst_23 = arith.constant dense<0.000000e+00> : vector<8x8xf32>
    %71 = tpu.matmul %68, %69, %cst_23 {dimension_numbers = #tpu.dot_dimension_numbers<[1], [1], [0], [0], [0, 0, 1, 0], [], []>} : vector<8x128xbf16>, vector<8x128xbf16>, vector<8x8xf32> -> vector<8x8xf32>
    %cst_24 = arith.constant 0xFF800000 : f32
    %72 = vector.broadcast %cst_24 : f32 to vector<8x8xf32>
    %73 = arith.select %7, %71, %72 : vector<8x8xi1>, vector<8x8xf32>
    %cst_25 = arith.constant dense<0xFF800000> : vector<8xf32>
    %74 = vector.multi_reduction <maximumf>, %73, %cst_25 [1] : vector<8x8xf32> to vector<8xf32>
    %75 = vector.shape_cast %74 : vector<8xf32> to vector<8x1xf32>
    %76 = vector.broadcast %75 : vector<8x1xf32> to vector<8x8xf32>
    %77 = arith.subf %73, %76 : vector<8x8xf32>
    %78 = math.exp %77 : vector<8x8xf32>
    %cst_26 = arith.constant dense<0.000000e+00> : vector<8xf32>
    %79 = vector.multi_reduction <add>, %78, %cst_26 [1] : vector<8x8xf32> to vector<8xf32>
    %80 = vector.shape_cast %79 : vector<8xf32> to vector<8x1xf32>
    %81 = tpu.reciprocal %80 {approx = true} : vector<8x1xf32> -> vector<8x1xf32>
    %82 = vector.broadcast %81 : vector<8x1xf32> to vector<8x8xf32>
    %83 = arith.mulf %78, %82 : vector<8x8xf32>
    %84 = arith.truncf %83 : vector<8x8xf32> to vector<8x8xbf16>
    %cst_27 = arith.constant dense<0.000000e+00> : vector<8x128xf32>
    %85 = tpu.matmul %84, %70, %cst_27 {dimension_numbers = #tpu.dot_dimension_numbers<[1], [0], [0], [1], [0, 0, 1, 1], [], []>} : vector<8x8xbf16>, vector<8x128xbf16>, vector<8x128xf32> -> vector<8x128xf32>
    %86 = arith.truncf %85 : vector<8x128xf32> to vector<8x128xbf16>
    %c8_28 = arith.constant 8 : index
    %c128_29 = arith.constant 128 : index
    %87 = vector.load %arg6[%c8_28, %c128_29] : memref<16x256xbf16, #tpu.memory_space<vmem>>, vector<8x128xbf16>
    tpu.vector_store %arg6[%c8_28, %c128_29], %86 {strides = array<i32>} : memref<16x256xbf16, #tpu.memory_space<vmem>>, vector<8x128xbf16>,
    %c0_30 = arith.constant 0 : index
    %c0_31 = arith.constant 0 : index
    %88 = vector.load %arg6[%c0_30, %c0_31] : memref<16x256xbf16, #tpu.memory_space<vmem>>, vector<16x256xbf16>
    %c0_32 = arith.constant 0 : index
    %c0_33 = arith.constant 0 : index
    %89 = vector.load %arg3[%c0_32, %c0_33] : memref<256x256xbf16, #tpu.memory_space<vmem>>, vector<256x256xbf16>
    %cst_34 = arith.constant dense<0.000000e+00> : vector<16x256xf32>
    %90 = tpu.matmul %88, %89, %cst_34 {dimension_numbers = #tpu.dot_dimension_numbers<[1], [0], [0], [1], [0, 0, 1, 1], [], []>} : vector<16x256xbf16>, vector<256x256xbf16>, vector<16x256xf32> -> vector<16x256xf32>
    %c0_35 = arith.constant 0 : index
    %c0_36 = arith.constant 0 : index
    %91 = vector.load %arg4[%c0_35, %c0_36] : memref<1x256xf32, #tpu.memory_space<vmem>>, vector<1x256xf32>
    %92 = vector.broadcast %91 : vector<1x256xf32> to vector<16x256xf32>
    %93 = arith.addf %90, %92 : vector<16x256xf32>
    %94 = vector.shape_cast %93 : vector<16x256xf32> to vector<2x8x256xf32>
    %c0_37 = arith.constant 0 : index
    %c0_38 = arith.constant 0 : index
    %c0_39 = arith.constant 0 : index
    %95 = vector.load %arg5[%c0_37, %c0_38, %c0_39] : memref<2x8x256xf32, #tpu.memory_space<vmem>>, vector<2x8x256xf32>
    tpu.vector_store %arg5[%c0_37, %c0_38, %c0_39], %94 {strides = array<i32>} : memref<2x8x256xf32, #tpu.memory_space<vmem>>, vector<2x8x256xf32>,
    return
  }
  func.func @transform_0(%arg0: i32) -> (i32, i32, i32) {
    %c0_i32 = arith.constant 0 : i32
    %c0_i32_0 = arith.constant 0 : i32
    %c0_i32_1 = arith.constant 0 : i32
    return %arg0, %c0_i32, %c0_i32_0 : i32, i32, i32
  }
  func.func @transform_1(%arg0: i32) -> (i32, i32) {
    %c0_i32 = arith.constant 0 : i32
    %c0_i32_0 = arith.constant 0 : i32
    %c0_i32_1 = arith.constant 0 : i32
    return %c0_i32, %c0_i32_0 : i32, i32
  }
  func.func @transform_2(%arg0: i32) -> (i32, i32) {
    %c0_i32 = arith.constant 0 : i32
    %c0_i32_0 = arith.constant 0 : i32
    %c0_i32_1 = arith.constant 0 : i32
    return %c0_i32, %c0_i32_0 : i32, i32
  }
  func.func @transform_3(%arg0: i32) -> (i32, i32) {
    %c0_i32 = arith.constant 0 : i32
    %c0_i32_0 = arith.constant 0 : i32
    %c0_i32_1 = arith.constant 0 : i32
    return %c0_i32, %c0_i32_0 : i32, i32
  }
  func.func @transform_4(%arg0: i32) -> (i32, i32, i32) {
    %c0_i32 = arith.constant 0 : i32
    %c0_i32_0 = arith.constant 0 : i32
    %c0_i32_1 = arith.constant 0 : i32
    return %arg0, %c0_i32, %c0_i32_0 : i32, i32, i32
  }
}

</mosaic_0001>

<bundles_post_ra>
// kernel: multi_head_attention.1
= control target key start
LH: loop header
LB: loop body
LE: loop exit
PB: predicated region body
PF: predicated region fallthrough
CT: control target
= control target key end

     0   :  { %9 = vsyncpa [#allocation4], 0  ;;  %s2127_s0 = inlined_call_operand.vmem [shape: bf16[2,8,256], index: 0, kind: input, shape index: {}]   ;;  %s2128_s1 = inlined_call_operand.hbm [shape: bf16[256,768], index: 1, kind: input, shape index: {}]   ;;  %s2129_s2 = inlined_call_operand.hbm [shape: bf16[256,256], index: 2, kind: input, shape index: {}]   ;;  %s2130_s3 = inlined_call_operand.vmem [shape: f32[1,256], index: 3, kind: input, shape index: {}]   ;;  %s2131_s4 = inlined_call_operand.hbm [shape: f32[2,8,256], index: 4, kind: output, shape index: {}]  }
   0x1   :  { %10 = vsyncpa [#allocation7], 0 }
   0x2   :  { %11 = vsyncpa [#allocation5], 0  ;;  %s1966_s15 = smov [#allocation3]   ;;  %s1894_s19 = scalar_lea.hbm %s2128_s1, 12288 }
   0x3   :  { %s19_s16 = sshll.u32 %s1966_s15, 4  ;;  %p1895_p0 = scmp.ne.s32.totalorder %s2128_s1, %s1894_s19  ;;  %s20_s16 = int_to_ptr.vmem [resolvable:$true] %s19_s16 }
   0x4   :  { %p1898_p1 = scmp.lt.u32.totalorder %s1894_s19, %s2128_s1 }
   0x6   :  { %p1900_p2 = pnand %p1898_p1, %p1895_p0 }
   0x8   :  { %1903 = shalt.err (!%p1900_p2)
}
   0x9   :  { %s1904_s24 = scalar_lea.vmem %s20_s16, 12288  ;;  %p1909_p4 = scmp.lt.s32.totalorder %s20_s16, %s20_s16 }
   0xa   :  { %p1905_p3 = scmp.ne.s32.totalorder %s20_s16, %s1904_s24  ;;  %p1910_p5 = scmp.lt.s32.totalorder %s1904_s24, %s1904_s24 }
   0xc   :  { %p1911_p6 = por %p1910_p5, %p1909_p4 }
   0xe   :  { %p1912_p7 = pnand %p1911_p6, %p1905_p3 }
  0x10   :  { %1915 = shalt.err (!%p1912_p7)
}
  0x11   :  { %s1967_s25 = smov 384   ;;  %s1968_s26 = smov 24  }
  0x12   :  { %25 = dma.hbm_to_vmem [thread:$0]  %s2128_s1, 12288, %s20_s16, [#allocation4], %s1967_s25, %s1967_s25, %s1968_s26  }
  0x13   :  { %s1969_s29 = smov [#allocation6]   ;;  %s1916_s7 = scalar_lea.hbm %s2129_s2, 4096 }
  0x14   :  { %s31_s30 = sshll.u32 %s1969_s29, 4  ;;  %p1917_p8 = scmp.ne.s32.totalorder %s2129_s2, %s1916_s7  ;;  %s32_s30 = int_to_ptr.vmem [resolvable:$true] %s31_s30 }
  0x15   :  { %p1920_p9 = scmp.lt.u32.totalorder %s1916_s7, %s2129_s2 }
  0x17   :  { %p1922_p10 = pnand %p1920_p9, %p1917_p8 }
  0x19   :  { %1925 = shalt.err (!%p1922_p10)
}
  0x1a   :  { %s1926_s12 = scalar_lea.vmem %s32_s30, 4096  ;;  %p1931_p12 = scmp.lt.s32.totalorder %s32_s30, %s32_s30 }
  0x1b   :  { %p1927_p11 = scmp.ne.s32.totalorder %s32_s30, %s1926_s12  ;;  %p1932_p13 = scmp.lt.s32.totalorder %s1926_s12, %s1926_s12 }
  0x1d   :  { %p1933_p0 = por %p1932_p13, %p1931_p12 }
  0x1f   :  { %p1934_p1 = pnand %p1933_p0, %p1927_p11 }
  0x21   :  { %1937 = shalt.err (!%p1934_p1)
}
  0x22   :  { %s1970_s1 = smov 128   ;;  %s1971_s13 = smov 8  }
  0x23   :  { %37 = dma.hbm_to_vmem [thread:$0]  %s2129_s2, 4096, %s32_s30, [#allocation7], %s1970_s1, %s1970_s1, %s1971_s13  }
  0x24   :  { %1960 = dma.done.wait [#allocation4], 12288  }
  0x25   :  { %1961 = vsyncadd [#allocation4], 4294955008 }
  0x26   :  { %1962 = dma.done.wait [#allocation7], 4096  }
  0x27   :  { %1963 = vsyncadd [#allocation7], 4294963200  ;;  %v1683_v0 = vld [vmem:[#allocation3 + $0xc] ss:$24 sps:$4 sm:$0xff]   ;;  %v1685_v1 = vld [vmem:[#allocation3 + $0x8] ss:$24 sps:$4 sm:$0xff]  }
  0x28   :  { %678 = vmatprep.subr.bf16.mxu1 %v1683_v0  ;;  %v1686_v2 = vld [vmem:[#allocation3 + $0x3c] ss:$24 sps:$4 sm:$0xff]   ;;  %v1690_v4 = vld [vmem:[#allocation3 + $0x38] ss:$24 sps:$4 sm:$0xff]   ;;  %v1692_v6 = vld [vmem:[#allocation3 + $0x6c] ss:$24 sps:$4 sm:$0xff]  }
  0x29   :  { %679 = vmatpush1.bf16.msra.mxu1 %v1685_v1  ;;  %v1688_v3 = vld [vmem:[#allocation3 + $0x4] ss:$24 sps:$4 sm:$0xff]   ;;  %v1691_v5 = vld [vmem:[#allocation3] ss:$24 sps:$4 sm:$0xff]   ;;  %v1694_v7 = vld [vmem:[#allocation3 + $0x34] ss:$24 sps:$4 sm:$0xff]  }
  0x2a   :  { %680 = vmatprep.subr.bf16.mxu1 %v1686_v2  ;;  %635 = vmatprep.subr.bf16.mxu0 %v1688_v3  ;;  %v1697_v8 = vld [vmem:[#allocation3 + $0x30] ss:$24 sps:$4 sm:$0xff]   ;;  %v1698_v10 = vld [vmem:[#allocation3 + $0x9c] ss:$24 sps:$4 sm:$0xff]   ;;  %v1703_v12 = vld [vmem:[#allocation3 + $0x60] ss:$24 sps:$4 sm:$0xff]  }
  0x2b   :  { %636 = vmatpush1.bf16.msra.mxu0 %v1691_v5  ;;  %v1696_v9 = vld [vmem:[#allocation3 + $0x68] ss:$24 sps:$4 sm:$0xff]   ;;  %v1700_v11 = vld [vmem:[#allocation3 + $0x64] ss:$24 sps:$4 sm:$0xff]   ;;  %v1702_v13 = vld [vmem:[#allocation3 + $0x98] ss:$24 sps:$4 sm:$0xff]  }
  0x2c   :  { %637 = vmatprep.subr.bf16.mxu0 %v1694_v7  ;;  %v1706_v14 = vld [vmem:[#allocation3 + $0x94] ss:$24 sps:$4 sm:$0xff]   ;;  %v1708_v16 = vld [vmem:[#allocation3 + $0xc8] ss:$24 sps:$4 sm:$0xff]   ;;  %v1712_v18 = vld [vmem:[#allocation3 + $0xc4] ss:$24 sps:$4 sm:$0xff]  }
  0x2d   :  { %681 = vmatpush1.bf16.msra.mxu1 %v1690_v4  ;;  %v1704_v15 = vld [vmem:[#allocation3 + $0xcc] ss:$24 sps:$4 sm:$0xff]   ;;  %v1709_v17 = vld [vmem:[#allocation3 + $0x90] ss:$24 sps:$4 sm:$0xff]   ;;  %v1710_v19 = vld [vmem:[#allocation3 + $0xfc] ss:$24 sps:$4 sm:$0xff]  }
  0x2e   :  { %682 = vmatprep.subr.bf16.mxu1 %v1692_v6  ;;  %v1715_v20 = vld [vmem:[#allocation3 + $0xc0] ss:$24 sps:$4 sm:$0xff]   ;;  %v1718_v22 = vld [vmem:[#allocation3 + $0xf4] ss:$24 sps:$4 sm:$0xff]   ;;  %v1721_v25 = vld [vmem:[#allocation3 + $0xf0] ss:$24 sps:$4 sm:$0xff]  }
  0x2f   :  { %638 = vmatpush1.bf16.msra.mxu0 %v1697_v8  ;;  %v1714_v21 = vld [vmem:[#allocation3 + $0xf8] ss:$24 sps:$4 sm:$0xff]   ;;  %v1716_v23 = vld [vmem:[#allocation3 + $0x12c] ss:$24 sps:$4 sm:$0xff]   ;;  %v1720_v24 = vld [vmem:[#allocation3 + $0x128] ss:$24 sps:$4 sm:$0xff]  }
  0x30   :  { %639 = vmatprep.subr.bf16.mxu0 %v1700_v11  ;;  %v1724_v26 = vld [vmem:[#allocation3 + $0x124] ss:$24 sps:$4 sm:$0xff]   ;;  %v1727_v28 = vld [vmem:[#allocation3 + $0x120] ss:$24 sps:$4 sm:$0xff]   ;;  %v1730_v30 = vld [vmem:[#allocation3 + $0x154] ss:$24 sps:$4 sm:$0xff]  }
  0x31   :  { %683 = vmatpush1.bf16.msra.mxu1 %v1696_v9  ;;  %v1722_v27 = vld [vmem:[#allocation3 + $0x15c] ss:$24 sps:$4 sm:$0xff]   ;;  %v1726_v29 = vld [vmem:[#allocation3 + $0x158] ss:$24 sps:$4 sm:$0xff]   ;;  %v1728_v31 = vld [vmem:[#allocation3 + $0x18c] ss:$24 sps:$4 sm:$0xff]  }
  0x32   :  { %684 = vmatprep.subr.bf16.mxu1 %v1698_v10  ;;  %v1732_v32 = vld [vmem:[#allocation3 + $0x188] ss:$24 sps:$4 sm:$0xff]   ;;  %v1736_v34 = vld [vmem:[#allocation3 + $0x184] ss:$24 sps:$4 sm:$0xff]   ;;  %v1738_v37 = vld [vmem:[#allocation3 + $0x1b8] ss:$24 sps:$4 sm:$0xff]  }
  0x33   :  { %640 = vmatpush1.bf16.msra.mxu0 %v1703_v12  ;;  %v1733_v33 = vld [vmem:[#allocation3 + $0x150] ss:$24 sps:$4 sm:$0xff]   ;;  %v1734_v35 = vld [vmem:[#allocation3 + $0x1bc] ss:$24 sps:$4 sm:$0xff]   ;;  %v1739_v36 = vld [vmem:[#allocation3 + $0x180] ss:$24 sps:$4 sm:$0xff]  }
  0x34   :  { %641 = vmatprep.subr.bf16.mxu0 %v1706_v14  ;;  %v1742_v38 = vld [vmem:[#allocation3 + $0x1b4] ss:$24 sps:$4 sm:$0xff]   ;;  %v1744_v40 = vld [vmem:[#allocation3 + $0x1e8] ss:$24 sps:$4 sm:$0xff]   ;;  %v1748_v42 = vld [vmem:[#allocation3 + $0x1e4] ss:$24 sps:$4 sm:$0xff]  }
  0x35   :  { %685 = vmatpush1.bf16.msra.mxu1 %v1702_v13  ;;  %v1740_v39 = vld [vmem:[#allocation3 + $0x1ec] ss:$24 sps:$4 sm:$0xff]   ;;  %v1745_v41 = vld [vmem:[#allocation3 + $0x1b0] ss:$24 sps:$4 sm:$0xff]   ;;  %v1746_v43 = vld [vmem:[#allocation3 + $0x21c] ss:$24 sps:$4 sm:$0xff]  }
  0x36   :  { %686 = vmatprep.subr.bf16.mxu1 %v1704_v15  ;;  %v1750_v44 = vld [vmem:[#allocation3 + $0x218] ss:$24 sps:$4 sm:$0xff]   ;;  %v1776_v46 = vld [vmem:[%s2127_s0 + $0x4] ss:$8 sps:$4 sm:$0xff]   ;;  %v1756_v50 = vld [vmem:[#allocation3 + $0x248] ss:$24 sps:$4 sm:$0xff]  }
  0x37   :  { %642 = vmatpush1.bf16.msra.mxu0 %v1709_v17  ;;  %v1751_v45 = vld [vmem:[#allocation3 + $0x1e0] ss:$24 sps:$4 sm:$0xff]   ;;  %v1752_v47 = vld [vmem:[#allocation3 + $0x24c] ss:$24 sps:$4 sm:$0xff]   ;;  %v1757_v49 = vld [vmem:[#allocation3 + $0x210] ss:$24 sps:$4 sm:$0xff]   ;;  %710 = vmatprep.mubr.bf16.mxu1 %v1776_v46 }
  0x38   :  { %643 = vmatprep.subr.bf16.mxu0 %v1712_v18  ;;  %v1754_v48 = vld [vmem:[#allocation3 + $0x214] ss:$24 sps:$4 sm:$0xff]   ;;  %v1760_v51 = vld [vmem:[#allocation3 + $0x244] ss:$24 sps:$4 sm:$0xff]   ;;  %667 = vmatprep.mubr.bf16.mxu0 %v1776_v46  ;;  %v1763_v53 = vld [vmem:[#allocation3 + $0x240] ss:$24 sps:$4 sm:$0xff]  }
  0x39   :  { %687 = vmatpush1.bf16.msra.mxu1 %v1708_v16  ;;  %v1758_v52 = vld [vmem:[#allocation3 + $0x27c] ss:$24 sps:$4 sm:$0xff]   ;;  %v1762_v54 = vld [vmem:[#allocation3 + $0x278] ss:$24 sps:$4 sm:$0xff]   ;;  %v1764_v56 = vld [vmem:[#allocation3 + $0x2ac] ss:$24 sps:$4 sm:$0xff]  }
  0x3a   :  { %688 = vmatprep.subr.bf16.mxu1 %v1710_v19  ;;  %v1766_v55 = vld [vmem:[#allocation3 + $0x274] ss:$24 sps:$4 sm:$0xff]   ;;  %v1769_v57 = vld [vmem:[#allocation3 + $0x270] ss:$24 sps:$4 sm:$0xff]   ;;  %v1772_v59 = vld [vmem:[#allocation3 + $0x2a4] ss:$24 sps:$4 sm:$0xff]  }
  0x3b   :  { %644 = vmatpush1.bf16.msra.mxu0 %v1715_v20  ;;  %v1768_v58 = vld [vmem:[#allocation3 + $0x2a8] ss:$24 sps:$4 sm:$0xff]   ;;  %v1770_v60 = vld [vmem:[#allocation3 + $0x2dc] ss:$24 sps:$4 sm:$0xff]   ;;  %v1774_v62 = vld [vmem:[#allocation3 + $0x2d8] ss:$24 sps:$4 sm:$0xff]  }
  0x3c   :  { %645 = vmatprep.subr.bf16.mxu0 %v1718_v22  ;;  %v1775_v61 = vld [vmem:[#allocation3 + $0x2a0] ss:$24 sps:$4 sm:$0xff]   ;;  %v1779_v63 = vld [vmem:[#allocation3 + $0x2d4] ss:$24 sps:$4 sm:$0xff]   ;;  %v1781_v1 = vld [vmem:[#allocation3 + $0x2d0] ss:$24 sps:$4 sm:$0xff]  }
  0x3d   :  { %689 = vmatpush1.bf16.msra.mxu1 %v1714_v21  ;;  %v2032_v0 = vld [vmem:[%s2127_s0] ss:$8 sps:$4 sm:$0xff]   ;;  %v1972_v2 = vmov 0.0   ;;  %vm1973_vm0 = vmmov 0   ;;  %v1784_v16 = vld [vmem:[#allocation3 + $0x14] ss:$24 sps:$4 sm:$0xff]  }
  0x3e   :  { %690 = vmatprep.subr.bf16.mxu1 %v1716_v23  ;;  %v1782_v15 = vld [vmem:[#allocation3 + $0x10] ss:$24 sps:$4 sm:$0xff]   ;;  %v1787_v17 = vld [vmem:[#allocation3 + $0x44] ss:$24 sps:$4 sm:$0xff]   ;;  %v1785_v18 = vld [vmem:[#allocation3 + $0x40] ss:$24 sps:$4 sm:$0xff]  }
  0x3f   :  { %646 = vmatpush1.bf16.msra.mxu0 %v1721_v25  ;;  %v1790_v19 = vld [vmem:[#allocation3 + $0x74] ss:$24 sps:$4 sm:$0xff]   ;;  %v1788_v20 = vld [vmem:[#allocation3 + $0x70] ss:$24 sps:$4 sm:$0xff]   ;;  %v1793_v21 = vld [vmem:[#allocation3 + $0xa4] ss:$24 sps:$4 sm:$0xff]  }
  0x40   :  { %647 = vmatprep.subr.bf16.mxu0 %v1724_v26  ;;  %v1791_v22 = vld [vmem:[#allocation3 + $0xa0] ss:$24 sps:$4 sm:$0xff]   ;;  %v1796_v23 = vld [vmem:[#allocation3 + $0xd4] ss:$24 sps:$4 sm:$0xff]   ;;  %v1799_v25 = vld [vmem:[#allocation3 + $0x104] ss:$24 sps:$4 sm:$0xff]  }
  0x41   :  { %691 = vmatpush1.bf16.msra.mxu1 %v1720_v24  ;;  %v1794_v24 = vld [vmem:[#allocation3 + $0xd0] ss:$24 sps:$4 sm:$0xff]   ;;  %v1797_v26 = vld [vmem:[#allocation3 + $0x100] ss:$24 sps:$4 sm:$0xff]   ;;  %vm816_vm2 = vcmask 64512   ;;  %vm832_vm3 = vcmask 1043456  }
  0x42   :  { %692 = vmatprep.subr.bf16.mxu1 %v1722_v27  ;;  %v1802_v27 = vld [vmem:[#allocation3 + $0x134] ss:$24 sps:$4 sm:$0xff]   ;;  %s1974_s20 = smov [#allocation8]  }
  0x43   :  { %648 = vmatpush1.bf16.msra.mxu0 %v1727_v28  ;;  %v1800_v28 = vld [vmem:[#allocation3 + $0x130] ss:$24 sps:$4 sm:$0xff]   ;;  %s1461_s21 = sshll.u32 %s1974_s20, 4  ;;  %s1462_s21 = int_to_ptr.vmem [resolvable:$true] %s1461_s21 }
  0x44   :  { %649 = vmatprep.subr.bf16.mxu0 %v1730_v30  ;;  %v1803_v30 = vld [vmem:[#allocation3 + $0x160] ss:$24 sps:$4 sm:$0xff]   ;;  %p1943_p3 = scmp.lt.s32.totalorder %s1462_s21, %s1462_s21 }
  0x45   :  { %693 = vmatpush1.bf16.msra.mxu1 %v1726_v29  ;;  %v1805_v29 = vld [vmem:[#allocation3 + $0x164] ss:$24 sps:$4 sm:$0xff]  }
  0x46   :  { %694 = vmatprep.subr.bf16.mxu1 %v1728_v31  ;;  %v1808_v31 = vld [vmem:[#allocation3 + $0x194] ss:$24 sps:$4 sm:$0xff]  }
  0x47   :  { %650 = vmatpush1.bf16.msra.mxu0 %v1733_v33  ;;  %v1811_v33 = vld [vmem:[#allocation3 + $0x1c4] ss:$24 sps:$4 sm:$0xff]  }
  0x48   :  { %651 = vmatprep.subr.bf16.mxu0 %v1736_v34  ;;  %v1809_v34 = vld [vmem:[#allocation3 + $0x1c0] ss:$24 sps:$4 sm:$0xff]  }
  0x49   :  { %695 = vmatpush1.bf16.msra.mxu1 %v1732_v32  ;;  %v1806_v32 = vld [vmem:[#allocation3 + $0x190] ss:$24 sps:$4 sm:$0xff]  }
  0x4a   :  { %696 = vmatprep.subr.bf16.mxu1 %v1734_v35  ;;  %v1814_v35 = vld [vmem:[#allocation3 + $0x1f4] ss:$24 sps:$4 sm:$0xff]  }
  0x4b   :  { %652 = vmatpush1.bf16.msra.mxu0 %v1739_v36  ;;  %v1812_v36 = vld [vmem:[#allocation3 + $0x1f0] ss:$24 sps:$4 sm:$0xff]  }
  0x4c   :  { %653 = vmatprep.subr.bf16.mxu0 %v1742_v38  ;;  %v1815_v38 = vld [vmem:[#allocation3 + $0x220] ss:$24 sps:$4 sm:$0xff]  }
  0x4d   :  { %697 = vmatpush1.bf16.msra.mxu1 %v1738_v37  ;;  %v1817_v37 = vld [vmem:[#allocation3 + $0x224] ss:$24 sps:$4 sm:$0xff]  }
  0x4e   :  { %698 = vmatprep.subr.bf16.mxu1 %v1740_v39  ;;  %v1820_v39 = vld [vmem:[#allocation3 + $0x254] ss:$24 sps:$4 sm:$0xff]  }
  0x4f   :  { %654 = vmatpush1.bf16.msra.mxu0 %v1745_v41  ;;  %v1823_v41 = vld [vmem:[#allocation3 + $0x284] ss:$24 sps:$4 sm:$0xff]  }
  0x50   :  { %655 = vmatprep.subr.bf16.mxu0 %v1748_v42  ;;  %v1821_v42 = vld [vmem:[#allocation3 + $0x280] ss:$24 sps:$4 sm:$0xff]  }
  0x51   :  { %699 = vmatpush1.bf16.msra.mxu1 %v1744_v40  ;;  %v1818_v40 = vld [vmem:[#allocation3 + $0x250] ss:$24 sps:$4 sm:$0xff]  }
  0x52   :  { %700 = vmatprep.subr.bf16.mxu1 %v1746_v43  ;;  %v1826_v43 = vld [vmem:[#allocation3 + $0x2b4] ss:$24 sps:$4 sm:$0xff]  }
  0x53   :  { %656 = vmatpush1.bf16.msra.mxu0 %v1751_v45  ;;  %v1829_v45 = vld [vmem:[#allocation3 + $0x2e4] ss:$24 sps:$4 sm:$0xff]  }
  0x54   :  { %657 = vmatprep.subr.bf16.mxu0 %v1754_v48 }
  0x55   :  { %701 = vmatpush1.bf16.msra.mxu1 %v1750_v44  ;;  %v1824_v44 = vld [vmem:[#allocation3 + $0x2b0] ss:$24 sps:$4 sm:$0xff]  }
  0x56   :  { %702 = vmatprep.subr.bf16.mxu1 %v1752_v47  ;;  %v770_v47 = vlaneseq }
  0x57   :  { %658 = vmatpush1.bf16.msra.mxu0 %v1757_v49 }
  0x58   :  { %659 = vmatprep.subr.bf16.mxu0 %v1760_v51  ;;  %v2053_v48 = vshrl.u32 %v770_v47, 7  ;;  %v2055_v49 = vand.u32 127, %v770_v47 }
  0x59   :  { %703 = vmatpush1.bf16.msra.mxu1 %v1756_v50 }
  0x5a   :  { %704 = vmatprep.subr.bf16.mxu1 %v1758_v52  ;;  %vm774_vm1 = vcmp.le.s32.totalorder %v2055_v49, %v2053_v48  ;;  %v1833_v49 = vld [vmem:[#allocation6 + $0x10] ss:$8 sps:$4 sm:$0xff]  }
  0x5b   :  { %660 = vmatpush1.bf16.msra.mxu0 %v1763_v53 }
  0x5c   :  { %661 = vmatprep.subr.bf16.mxu0 %v1766_v55 }
  0x5d   :  { %705 = vmatpush1.bf16.msra.mxu1 %v1762_v54 }
  0x5e   :  { %706 = vmatprep.subr.bf16.mxu1 %v1764_v56 }
  0x5f   :  { %662 = vmatpush1.bf16.msra.mxu0 %v1769_v57 }
  0x60   :  { %663 = vmatprep.subr.bf16.mxu0 %v1772_v59 }
  0x61   :  { %707 = vmatpush1.bf16.msra.mxu1 %v1768_v58 }
  0x62   :  { %708 = vmatprep.subr.bf16.mxu1 %v1770_v60 }
  0x63   :  { %664 = vmatpush1.bf16.msra.mxu0 %v1775_v61 }
  0x64   :  { %665 = vmatprep.subr.bf16.mxu0 %v1779_v63 }
  0x65   :  { %709 = vmatpush1.bf16.msra.mxu1 %v1774_v62 }
  0x66   :  { %1624 = vmatprep.subr.bf16.mxu1 %v1972_v2 }
  0x67   :  { %666 = vmatpush1.bf16.msra.mxu0 %v1781_v1 }
  0x68   :  { %711 = vmatmul.mubr.bf16.vlgmr.msra.gmra.mrb[0].mxu1 %v2032_v0  ;;  %721 = vmatprep.subr.bf16.mxu0 %v1784_v16 }
  0x69   :  { %1626 = vmatprep.mubr.msk.bf16.mxu1 %vm1973_vm0, %v1972_v2 }
  0x6a   :  { %668 = vmatmul.mubr.bf16.vlgmr.msra.gmra.mrb[0].mxu0 %v2032_v0 }
  0x6b   :  { %753 = vmatprep.mubr.bf16.mxu0 %v1776_v46  ;;  %722 = vmatpush1.bf16.msra.mxu0 %v1782_v15  ;;  %v1827_v46 = vld [vmem:[#allocation3 + $0x2e0] ss:$24 sps:$4 sm:$0xff]  }
  0x6c   :  { %723 = vmatprep.subr.bf16.mxu0 %v1787_v17 }
  0x6f   :  { %724 = vmatpush1.bf16.msra.mxu0 %v1785_v18 }
  0x70   :  { %725 = vmatprep.subr.bf16.mxu0 %v1790_v19 }
  0x73   :  { %726 = vmatpush1.bf16.msra.mxu0 %v1788_v20 }
  0x74   :  { %727 = vmatprep.subr.bf16.mxu0 %v1793_v21 }
  0x77   :  { %728 = vmatpush1.bf16.msra.mxu0 %v1791_v22 }
  0x78   :  { %729 = vmatprep.subr.bf16.mxu0 %v1796_v23 }
  0x7b   :  { %730 = vmatpush1.bf16.msra.mxu0 %v1794_v24 }
  0x7c   :  { %731 = vmatprep.subr.bf16.mxu0 %v1799_v25 }
  0x7f   :  { %732 = vmatpush1.bf16.msra.mxu0 %v1797_v26 }
  0x80   :  { %733 = vmatprep.subr.bf16.mxu0 %v1802_v27 }
  0x83   :  { %734 = vmatpush1.bf16.msra.mxu0 %v1800_v28 }
  0x84   :  { %735 = vmatprep.subr.bf16.mxu0 %v1805_v29 }
  0x87   :  { %736 = vmatpush1.bf16.msra.mxu0 %v1803_v30 }
  0x88   :  { %737 = vmatprep.subr.bf16.mxu0 %v1808_v31 }
  0x8b   :  { %738 = vmatpush1.bf16.msra.mxu0 %v1806_v32 }
  0x8c   :  { %739 = vmatprep.subr.bf16.mxu0 %v1811_v33 }
  0x8f   :  { %740 = vmatpush1.bf16.msra.mxu0 %v1809_v34 }
  0x90   :  { %741 = vmatprep.subr.bf16.mxu0 %v1814_v35 }
  0x93   :  { %742 = vmatpush1.bf16.msra.mxu0 %v1812_v36 }
  0x94   :  { %743 = vmatprep.subr.bf16.mxu0 %v1817_v37 }
  0x97   :  { %744 = vmatpush1.bf16.msra.mxu0 %v1815_v38 }
  0x98   :  { %745 = vmatprep.subr.bf16.mxu0 %v1820_v39 }
  0x9b   :  { %746 = vmatpush1.bf16.msra.mxu0 %v1818_v40 }
  0x9c   :  { %747 = vmatprep.subr.bf16.mxu0 %v1823_v41 }
  0x9f   :  { %748 = vmatpush1.bf16.msra.mxu0 %v1821_v42 }
  0xa0   :  { %749 = vmatprep.subr.bf16.mxu0 %v1826_v43 }
  0xa3   :  { %750 = vmatpush1.bf16.msra.mxu0 %v1824_v44 }
  0xa4   :  { %751 = vmatprep.subr.bf16.mxu0 %v1829_v45 }
  0xa7   :  { %752 = vmatpush1.bf16.msra.mxu0 %v1827_v46 }
  0xaa   :  { %754 = vmatmul.mubr.bf16.vlgmr.msra.gmra.mrb[4].mxu0 %v2032_v0 }
 0x13b   :  { %v712_v3 = vpop.f32.mrb[0].mxu1 }
 0x13c   :  { %v714_v4 = vpop.f32.mrb[1].mxu1 }
 0x13d   :  { %v716_v5 = vpop.f32.mrb[2].mxu1  ;;  %v669_v8 = vpop.f32.mrb[0].mxu0 }
 0x13e   :  { %v2039_v6 = vpack.c.bf16 %v716_v5, %v712_v3  ;;  %v718_v7 = vpop.f32.mrb[3].mxu1  ;;  %v671_v10 = vpop.f32.mrb[1].mxu0 }
 0x13f   :  { %v2041_v9 = vpack.c.bf16 %v718_v7, %v714_v4  ;;  %v673_v11 = vpop.f32.mrb[2].mxu0 }
 0x140   :  { %1625 = vmatpush3.bf16.xpose.msra.mxu1 %v2039_v6  ;;  %v2044_v12 = vpack.c.bf16 %v673_v11, %v669_v8  ;;  %v675_v13 = vpop.f32.mrb[3].mxu0  ;;  %v983_v38 = vrot.slane %v2039_v6, 4 }
 0x141   :  { %1630 = vmatprep.subr.bf16.mxu1 %v1972_v2  ;;  %v2047_v14 = vpack.c.bf16 %v675_v13, %v671_v10 }
 0x142   :  { %v980_v39 = vrot.slane %v2044_v12, 4 }
 0x147   :  { %1627 = vmatmul.mubr.bf16.vlgmr.msra.gmra.mrb[4].mxu1 %v2044_v12 }
 0x148   :  { %1632 = vmatprep.mubr.msk.bf16.mxu1 %vm1973_vm0, %v1972_v2 }
 0x17d   :  { %v755_v59 = vpop.f32.mrb[4].mxu0 }
 0x17e   :  { %v757_v62 = vpop.f32.mrb[5].mxu0 }
 0x17f   :  { %v759_v63 = vpop.f32.mrb[6].mxu0 }
 0x180   :  { %v761_v0 = vpop.f32.mrb[7].mxu0  ;;  %v768_v1 = vpack.c.bf16 %v759_v63, %v755_v59 }
 0x181   :  { %v769_v3 = vpack.c.bf16 %v761_v0, %v757_v62 }
 0x182   :  { %v834_v4 = vsel %vm832_vm3, %v768_v1, 0  ;;  %v1039_v5 = vrot.slane %v768_v1, 4 }
 0x183   :  { %v935_v7 = vsel %vm832_vm3, %v769_v3, 0  ;;  %v1151_v8 = vrot.slane %v769_v3, 4  ;;  %1631 = vmatpush3.bf16.msra.mxu1 %v834_v4 }
 0x184   :  { %1636 = vmatprep.subr.bf16.mxu1 %v1972_v2  ;;  %v1044_v10 = vsel %vm832_vm3, %v1039_v5, 0 }
 0x185   :  { %v2065_v11 = vsel %vm832_vm3, %v1151_v8, 0 }
 0x21a   :  { %v809_v50 = vpop.f32.mrb[4].mxu1 }
 0x21b   :  { %v815_v51 = vsel %vm774_vm1, %v809_v50, -inf  ;;  %v1628_v52 = vpop.f32.mrb[5].mxu1 }
 0x21c   :  { %v812_v53 = vpop.f32.mrb[6].mxu1  ;;  %v817_v54 = vsel %vm816_vm2, %v815_v51, -inf }
 0x21d   :  { %818 = vmax.xlane.f32.xlu0 %v817_v54  ;;  %v1629_v55 = vpop.f32.mrb[7].mxu1 }
 0x2aa   :  { %v819_v56 = vpop.xlane.xlu0 %818 }
 0x2ab   :  { %v820_v57 = vsub.f32 %v815_v51, %v819_v56 }
 0x2ad   :  { %v821_v58 = vmul.f32 1.442695, %v820_v57 }
 0x2af   :  { %1878 = vpow2.f32 %v821_v58 }
 0x2b9   :  { %v1879_v60 = vpop.eup %1878 }
 0x2ba   :  { %v823_v61 = vsel %vm816_vm2, %v1879_v60, 0.0 }
 0x2bb   :  { %824 = vadd.xlane.f32.xlu0 %v823_v61  ;;  %v1092_v61 = vrot.slane %v2047_v14, 4 }
 0x348   :  { %v825_v13 = vpop.xlane.xlu0 %824 }
 0x349   :  { %1880 = vrcp.f32 %v825_v13 }
 0x353   :  { %v1881_v15 = vpop.eup %1880 }
 0x354   :  { %v827_v16 = vmul.f32 %v1881_v15, %v1879_v60  ;;  %v1095_v60 = vrot.slane %v2041_v9, 4 }
 0x356   :  { %v828_v17 = vpack.c.bf16 %v827_v16, %v827_v16 }
 0x358   :  { %1633 = vmatmul.mubr.msk.bf16.vlgmr.msra.gmra.mrb[8].mxu1 %vm816_vm2, %v828_v17  ;;  %v1830_v17 = vld [vmem:[#allocation6] ss:$8 sps:$4 sm:$0xff]  }
 0x359   :  { %1637 = vmatpush3.bf16.xpose.msra.mxu1 %v2041_v9  ;;  %1638 = vmatprep.mubr.msk.bf16.mxu1 %vm1973_vm0, %v1972_v2 }
 0x35a   :  { %1642 = vmatprep.subr.bf16.mxu1 %v1972_v2 }
 0x360   :  { %1639 = vmatmul.mubr.bf16.vlgmr.msra.gmra.mrb[12].mxu1 %v2047_v14 }
 0x361   :  { %1643 = vmatpush3.bf16.msra.mxu1 %v935_v7  ;;  %1644 = vmatprep.mubr.msk.bf16.mxu1 %vm1973_vm0, %v1972_v2 }
 0x362   :  { %1648 = vmatprep.subr.bf16.mxu1 %v1972_v2 }
 0x42b   :  { %v870_v18 = vpop.f32.mrb[8].mxu1 }
 0x42c   :  { %v876_v19 = vpack.c.bf16 %v870_v18, %v870_v18  ;;  %v1634_v20 = vpop.f32.mrb[9].mxu1  ;;  %v1832_v18 = vld [vmem:[#allocation6 + $0x4] ss:$8 sps:$4 sm:$0xff]  }
 0x42d   :  { %v873_v21 = vpop.f32.mrb[10].mxu1  ;;  %1409 = vmatprep.subr.bf16.mxu0 %v1832_v18  ;;  %v1838_v20 = vld [vmem:[#allocation6 + $0x24] ss:$8 sps:$4 sm:$0xff]  }
 0x42e   :  { %877 = vst [vmem:[#allocation2] sm:$0xf] %v876_v19  ;;  %v1635_v22 = vpop.f32.mrb[11].mxu1  ;;  %v1835_v19 = vld [vmem:[#allocation6 + $0x14] ss:$8 sps:$4 sm:$0xff]   ;;  %1410 = vmatpush1.bf16.msra.mxu0 %v1830_v17 }
 0x42f   :  { %1411 = vmatprep.subr.bf16.mxu0 %v1835_v19  ;;  %v1836_v21 = vld [vmem:[#allocation6 + $0x20] ss:$8 sps:$4 sm:$0xff]   ;;  %v1841_v22 = vld [vmem:[#allocation6 + $0x34] ss:$8 sps:$4 sm:$0xff]  }
 0x432   :  { %1412 = vmatpush1.bf16.msra.mxu0 %v1833_v49 }
 0x433   :  { %v912_v23 = vpop.f32.mrb[12].mxu1  ;;  %1413 = vmatprep.subr.bf16.mxu0 %v1838_v20 }
 0x434   :  { %v918_v24 = vsel %vm774_vm1, %v912_v23, -inf  ;;  %v1640_v25 = vpop.f32.mrb[13].mxu1  ;;  %v1839_v23 = vld [vmem:[#allocation6 + $0x30] ss:$8 sps:$4 sm:$0xff]  }
 0x435   :  { %v915_v26 = vpop.f32.mrb[14].mxu1  ;;  %v919_v27 = vsel %vm816_vm2, %v918_v24, -inf  ;;  %v1842_v25 = vld [vmem:[#allocation6 + $0x40] ss:$8 sps:$4 sm:$0xff]  }
 0x436   :  { %920 = vmax.xlane.f32.xlu1 %v919_v27  ;;  %v1641_v28 = vpop.f32.mrb[15].mxu1  ;;  %1414 = vmatpush1.bf16.msra.mxu0 %v1836_v21  ;;  %v1847_v26 = vld [vmem:[#allocation6 + $0x54] ss:$8 sps:$4 sm:$0xff]   ;;  %v1845_v27 = vld [vmem:[#allocation6 + $0x50] ss:$8 sps:$4 sm:$0xff]  }
 0x437   :  { %1415 = vmatprep.subr.bf16.mxu0 %v1841_v22  ;;  %v1850_v28 = vld [vmem:[#allocation6 + $0x64] ss:$8 sps:$4 sm:$0xff]  }
 0x43a   :  { %1416 = vmatpush1.bf16.msra.mxu0 %v1839_v23 }
 0x4c3   :  { %v921_v29 = vpop.xlane.xlu1 %920 }
 0x4c4   :  { %v922_v30 = vsub.f32 %v918_v24, %v921_v29  ;;  %v1844_v24 = vld [vmem:[#allocation6 + $0x44] ss:$8 sps:$4 sm:$0xff]   ;;  %v1848_v29 = vld [vmem:[#allocation6 + $0x60] ss:$8 sps:$4 sm:$0xff]  }
 0x4c5   :  { %1417 = vmatprep.subr.bf16.mxu0 %v1844_v24 }
 0x4c6   :  { %v923_v31 = vmul.f32 1.442695, %v922_v30  ;;  %1418 = vmatpush1.bf16.msra.mxu0 %v1842_v25  ;;  %v1853_v30 = vld [vmem:[#allocation6 + $0x74] ss:$8 sps:$4 sm:$0xff]  }
 0x4c7   :  { %1419 = vmatprep.subr.bf16.mxu0 %v1847_v26 }
 0x4c8   :  { %1882 = vpow2.f32 %v923_v31  ;;  %v1851_v31 = vld [vmem:[#allocation6 + $0x70] ss:$8 sps:$4 sm:$0xff]  }
 0x4ca   :  { %1420 = vmatpush1.bf16.msra.mxu0 %v1845_v27 }
 0x4cb   :  { %1421 = vmatprep.subr.bf16.mxu0 %v1850_v28 }
 0x4ce   :  { %1422 = vmatpush1.bf16.msra.mxu0 %v1848_v29 }
 0x4cf   :  { %1423 = vmatprep.subr.bf16.mxu0 %v1853_v30 }
 0x4d2   :  { %v1883_v32 = vpop.eup %1882  ;;  %1424 = vmatpush1.bf16.msra.mxu0 %v1851_v31 }
 0x4d3   :  { %v925_v33 = vsel %vm816_vm2, %v1883_v32, 0.0 }
 0x4d4   :  { %926 = vadd.xlane.f32.xlu1 %v925_v33  ;;  %v1854_v33 = vld [vmem:[#allocation6 + $0x80] ss:$8 sps:$4 sm:$0xff]  }
 0x561   :  { %v927_v34 = vpop.xlane.xlu1 %926 }
 0x562   :  { %1884 = vrcp.f32 %v927_v34  ;;  %v1859_v34 = vld [vmem:[#allocation6 + $0x94] ss:$8 sps:$4 sm:$0xff]  }
 0x56c   :  { %v1885_v35 = vpop.eup %1884 }
 0x56d   :  { %v929_v36 = vmul.f32 %v1885_v35, %v1883_v32  ;;  %v1856_v32 = vld [vmem:[#allocation6 + $0x84] ss:$8 sps:$4 sm:$0xff]   ;;  %v1857_v35 = vld [vmem:[#allocation6 + $0x90] ss:$8 sps:$4 sm:$0xff]  }
 0x56e   :  { %1425 = vmatprep.subr.bf16.mxu0 %v1856_v32 }
 0x56f   :  { %v930_v37 = vpack.c.bf16 %v929_v36, %v929_v36  ;;  %1426 = vmatpush1.bf16.msra.mxu0 %v1854_v33  ;;  %v1862_v36 = vld [vmem:[#allocation6 + $0xa4] ss:$8 sps:$4 sm:$0xff]  }
 0x570   :  { %1427 = vmatprep.subr.bf16.mxu0 %v1859_v34 }
 0x571   :  { %1645 = vmatmul.mubr.msk.bf16.vlgmr.msra.gmra.mrb[16].mxu1 %vm816_vm2, %v930_v37  ;;  %v1860_v37 = vld [vmem:[#allocation6 + $0xa0] ss:$8 sps:$4 sm:$0xff]  }
 0x572   :  { %1649 = vmatpush3.bf16.xpose.msra.mxu1 %v983_v38  ;;  %1650 = vmatprep.mubr.msk.bf16.mxu1 %vm1973_vm0, %v1972_v2  ;;  %v1865_v38 = vld [vmem:[#allocation6 + $0xb4] ss:$8 sps:$4 sm:$0xff]  }
 0x573   :  { %1654 = vmatprep.subr.bf16.mxu1 %v1972_v2  ;;  %1428 = vmatpush1.bf16.msra.mxu0 %v1857_v35 }
 0x574   :  { %1429 = vmatprep.subr.bf16.mxu0 %v1862_v36 }
 0x577   :  { %1430 = vmatpush1.bf16.msra.mxu0 %v1860_v37 }
 0x578   :  { %1431 = vmatprep.subr.bf16.mxu0 %v1865_v38 }
 0x579   :  { %1651 = vmatmul.mubr.bf16.vlgmr.msra.gmra.mrb[20].mxu1 %v980_v39  ;;  %v1863_v39 = vld [vmem:[#allocation6 + $0xb0] ss:$8 sps:$4 sm:$0xff]  }
 0x57a   :  { %1655 = vmatpush3.bf16.msra.mxu1 %v1044_v10  ;;  %1656 = vmatprep.mubr.msk.bf16.mxu1 %vm1973_vm0, %v1972_v2 }
 0x57b   :  { %1660 = vmatprep.subr.bf16.mxu1 %v1972_v2  ;;  %1432 = vmatpush1.bf16.msra.mxu0 %v1863_v39 }
 0x644   :  { %v971_v40 = vpop.f32.mrb[16].mxu1 }
 0x645   :  { %v977_v41 = vpack.c.bf16 %v971_v40, %v971_v40  ;;  %v1646_v6 = vpop.f32.mrb[17].mxu1  ;;  %v1868_v40 = vld [vmem:[#allocation6 + $0xc4] ss:$8 sps:$4 sm:$0xff]  }
 0x646   :  { %v974_v42 = vpop.f32.mrb[18].mxu1  ;;  %1433 = vmatprep.subr.bf16.mxu0 %v1868_v40 }
 0x647   :  { %978 = vst [vmem:[#allocation2 + $0x8] sm:$0xf] %v977_v41  ;;  %v1647_v43 = vpop.f32.mrb[19].mxu1  ;;  %v1866_v41 = vld [vmem:[#allocation6 + $0xc0] ss:$8 sps:$4 sm:$0xff]  }
 0x648   :  { %1434 = vmatpush1.bf16.msra.mxu0 %v1866_v41 }
 0x64c   :  { %v1019_v44 = vpop.f32.mrb[20].mxu1 }
 0x64d   :  { %v1025_v45 = vsel %vm774_vm1, %v1019_v44, -inf  ;;  %v1652_v46 = vpop.f32.mrb[21].mxu1 }
 0x64e   :  { %v1022_v12 = vpop.f32.mrb[22].mxu1  ;;  %v1026_v47 = vsel %vm816_vm2, %v1025_v45, -inf  ;;  %v1869_v46 = vld [vmem:[#allocation6 + $0xd0] ss:$8 sps:$4 sm:$0xff]  }
 0x64f   :  { %1027 = vmax.xlane.f32.xlu0 %v1026_v47  ;;  %v1653_v50 = vpop.f32.mrb[23].mxu1  ;;  %v1872_v12 = vld [vmem:[#allocation6 + $0xe0] ss:$8 sps:$4 sm:$0xff]   ;;  %v1874_v47 = vld [vmem:[#allocation6 + $0xe4] ss:$8 sps:$4 sm:$0xff]  }
 0x650   :  { %v1877_v50 = vld [vmem:[#allocation6 + $0xf4] ss:$8 sps:$4 sm:$0xff]  }
 0x6dc   :  { %v1028_v51 = vpop.xlane.xlu0 %1027 }
 0x6dd   :  { %v1029_v52 = vsub.f32 %v1025_v45, %v1028_v51  ;;  %v1871_v45 = vld [vmem:[#allocation6 + $0xd4] ss:$8 sps:$4 sm:$0xff]   ;;  %v1875_v51 = vld [vmem:[#allocation6 + $0xf0] ss:$8 sps:$4 sm:$0xff]  }
 0x6de   :  { %1435 = vmatprep.subr.bf16.mxu0 %v1871_v45 }
 0x6df   :  { %v1030_v53 = vmul.f32 1.442695, %v1029_v52  ;;  %1436 = vmatpush1.bf16.msra.mxu0 %v1869_v46 }
 0x6e0   :  { %1437 = vmatprep.subr.bf16.mxu0 %v1874_v47 }
 0x6e1   :  { %1886 = vpow2.f32 %v1030_v53 }
 0x6e3   :  { %1438 = vmatpush1.bf16.msra.mxu0 %v1872_v12 }
 0x6e4   :  { %1439 = vmatprep.subr.bf16.mxu0 %v1877_v50 }
 0x6e7   :  { %1440 = vmatpush1.bf16.msra.mxu0 %v1875_v51 }
 0x6eb   :  { %v1887_v54 = vpop.eup %1886 }
 0x6ec   :  { %v1032_v55 = vsel %vm816_vm2, %v1887_v54, 0.0 }
 0x6ed   :  { %1033 = vadd.xlane.f32.xlu1 %v1032_v55 }
 0x77a   :  { %v1034_v56 = vpop.xlane.xlu1 %1033 }
 0x77b   :  { %1888 = vrcp.f32 %v1034_v56 }
 0x785   :  { %v1889_v57 = vpop.eup %1888 }
 0x786   :  { %v1036_v58 = vmul.f32 %v1889_v57, %v1887_v54 }
 0x788   :  { %v1037_v59 = vpack.c.bf16 %v1036_v58, %v1036_v58 }
 0x78a   :  { %1657 = vmatmul.mubr.msk.bf16.vlgmr.msra.gmra.mrb[24].mxu1 %vm816_vm2, %v1037_v59 }
 0x78b   :  { %1661 = vmatpush3.bf16.xpose.msra.mxu1 %v1095_v60  ;;  %1662 = vmatprep.mubr.msk.bf16.mxu1 %vm1973_vm0, %v1972_v2  ;;  %v1241_v60 = vsub.s32 0, %v2053_v48 }
 0x78c   :  { %1666 = vmatprep.subr.bf16.mxu1 %v1972_v2 }
 0x792   :  { %1663 = vmatmul.mubr.bf16.vlgmr.msra.gmra.mrb[28].mxu1 %v1092_v61  ;;  %v1237_v61 = vld [vmem:[%s2130_s3] sm:$0x3]  ;;  %s1938_s3 = scalar_lea.vmem %s1462_s21, 512 }
 0x793   :  { %1667 = vmatpush3.bf16.msra.mxu1 %v2065_v11  ;;  %1668 = vmatprep.mubr.msk.bf16.mxu1 %vm1973_vm0, %v1972_v2  ;;  %p1939_p2 = scmp.ne.s32.totalorder %s1462_s21, %s1938_s3  ;;  %p1944_p4 = scmp.lt.s32.totalorder %s1938_s3, %s1938_s3 }
 0x795   :  { %p1945_p5 = por %p1944_p4, %p1943_p3 }
 0x797   :  { %p1946_p6 = pnand %p1945_p5, %p1939_p2 }
 0x85d   :  { %v1080_v62 = vpop.f32.mrb[24].mxu1 }
 0x85e   :  { %v1086_v63 = vpack.c.bf16 %v1080_v62, %v1080_v62  ;;  %v1658_v0 = vpop.f32.mrb[25].mxu1  ;;  %v1245_v62 = vsub.s32 1, %v2053_v48 }
 0x85f   :  { %v1083_v9 = vpop.f32.mrb[26].mxu1 }
 0x860   :  { %v1088_v1 = vrot.slane %v1086_v63, 4  ;;  %v1659_v3 = vpop.f32.mrb[27].mxu1  ;;  %v1242_v63 = vrot.slane %v1237_v61, %v1241_v60  ;;  %v1246_v0 = vrot.slane %v1237_v61, %v1245_v62 }
 0x862   :  { %1090 = vst [vmem:[#allocation2] sm:$0xf0] %v1088_v1 }
 0x865   :  { %v1131_v4 = vpop.f32.mrb[28].mxu1 }
 0x866   :  { %v1137_v5 = vsel %vm774_vm1, %v1131_v4, -inf  ;;  %v1664_v7 = vpop.f32.mrb[29].mxu1 }
 0x867   :  { %v1134_v14 = vpop.f32.mrb[30].mxu1  ;;  %v1138_v8 = vsel %vm816_vm2, %v1137_v5, -inf }
 0x868   :  { %1139 = vmax.xlane.f32.xlu0 %v1138_v8  ;;  %v1665_v10 = vpop.f32.mrb[31].mxu1 }
 0x869   :  { %v1203_v59 = vld [vmem:[#allocation2] sm:$0xff] }
 0x8f5   :  { %v1140_v11 = vpop.xlane.xlu0 %1139 }
 0x8f6   :  { %v1141_v2 = vsub.f32 %v1137_v5, %v1140_v11 }
 0x8f8   :  { %v1142_v13 = vmul.f32 1.442695, %v1141_v2 }
 0x8fa   :  { %1890 = vpow2.f32 %v1142_v13 }
 0x904   :  { %v1891_v15 = vpop.eup %1890 }
 0x905   :  { %v1144_v16 = vsel %vm816_vm2, %v1891_v15, 0.0 }
 0x906   :  { %1145 = vadd.xlane.f32.xlu1 %v1144_v16 }
 0x993   :  { %v1146_v6 = vpop.xlane.xlu1 %1145 }
 0x994   :  { %1892 = vrcp.f32 %v1146_v6 }
 0x99e   :  { %v1893_v42 = vpop.eup %1892 }
 0x99f   :  { %v1148_v43 = vmul.f32 %v1893_v42, %v1891_v15 }
 0x9a1   :  { %v1149_v44 = vpack.c.bf16 %v1148_v43, %v1148_v43 }
 0x9a3   :  { %1669 = vmatmul.mubr.msk.bf16.vlgmr.msra.gmra.mrb[32].mxu1 %vm816_vm2, %v1149_v44 }
 0xa76   :  { %v1192_v52 = vpop.f32.mrb[32].mxu1 }
 0xa77   :  { %v1198_v53 = vpack.c.bf16 %v1192_v52, %v1192_v52  ;;  %v1670_v54 = vpop.f32.mrb[33].mxu1 }
 0xa78   :  { %v1195_v55 = vpop.f32.mrb[34].mxu1 }
 0xa79   :  { %v1200_v56 = vrot.slane %v1198_v53, 4  ;;  %v1671_v57 = vpop.f32.mrb[35].mxu1 }
 0xa7b   :  { %1202 = vst [vmem:[#allocation2 + $0x8] sm:$0xf0] %v1200_v56 }
 0xa82   :  { %v1204_v58 = vld [vmem:[#allocation2 + $0x8] sm:$0xff] }
 0xa83   :  { %1441 = vmatprep.mubr.bf16.mxu0 %v1204_v58 }
 0xa84   :  { %1442 = vmatmul.mubr.bf16.vlgmr.msra.gmra.mrb[8].mxu0 %v1203_v59 }
 0xb57   :  { %v1443_v9 = vpop.f32.mrb[8].mxu0 }
 0xb58   :  { %v1444_v1 = vadd.f32 %v1443_v9, %v1242_v63  ;;  %v1445_v3 = vpop.f32.mrb[9].mxu0 }
 0xb59   :  { %v1446_v4 = vadd.f32 %v1445_v3, %v1246_v0  ;;  %v1447_v5 = vpop.f32.mrb[10].mxu0 }
 0xb5a   :  { %1452 = vst [vmem:[#allocation8] sm:$0xff] %v1444_v1  ;;  %v1448_v7 = vadd.f32 %v1447_v5, %v1242_v63  ;;  %v1449_v14 = vpop.f32.mrb[11].mxu0 }
 0xb5b   :  { %1453 = vst [vmem:[#allocation8 + $0x8] sm:$0xff] %v1446_v4  ;;  %v1450_v8 = vadd.f32 %v1449_v14, %v1246_v0 }
 0xb5c   :  { %1454 = vst [vmem:[#allocation8 + $0x10] sm:$0xff] %v1448_v7 }
 0xb5d   :  { %1455 = vst [vmem:[#allocation8 + $0x18] sm:$0xff] %v1450_v8 }
 0xb5e   :  { %1949 = shalt.err (!%p1946_p6)
}
 0xb5f   :  { %s1950_s24 = scalar_lea.hbm %s2131_s4, 512 }
 0xb60   :  { %p1951_p7 = scmp.ne.s32.totalorder %s2131_s4, %s1950_s24  ;;  %p1954_p8 = scmp.lt.u32.totalorder %s1950_s24, %s2131_s4 }
 0xb62   :  { %p1956_p9 = pnand %p1954_p8, %p1951_p7 }
 0xb64   :  { %1959 = shalt.err (!%p1956_p9)
}
 0xb65   :  { %s1975_s29 = smov 256   ;;  %s1976_s30 = smov 16  }
 0xb66   :  { %1467 = dma.vmem_to_hbm [thread:$0]  %s1462_s21, 512, %s2131_s4, [#allocation5], %s1975_s29, %s1975_s29, %s1976_s30  }
 0xb67   :  { %1964 = dma.done.wait [#allocation5], 512  }
 0xb68   :  { %1965 = vsyncadd [#allocation5], 4294966784 }
 0xb69   :  { %1471 = vsyncpa [#allocation4], 1 }
 0xb6a   :  { %1472 = vsyncpa [#allocation7], 1 }
 0xb6b   :  { %1473 = vsyncpa [#allocation5], 1 }

</bundles_post_ra>
